<compile_context>
chip_gen: v7x
topology: tpu7x:2x2x1
jax: 0.10.0
libtpu: 0.0.40
codegen_flags: <defaults>
</compile_context>

<pallas_src>
import functools

import jax
import jax.numpy as jnp
from jax.experimental import pallas as pl
from jax.experimental.pallas import tpu as pltpu


def _round_up(x, m):
    return ((x + m - 1) // m) * m


def _row_tile(hw, k_pad, dtype_bytes=2, budget_bytes=4 << 20):
    """Row tile for the im2col matrix.

    Whole HW if its double-buffered patch slab fits `budget_bytes`, else the
    largest multiple-of-8 divisor of HW that does.  Budget is sized so the
    double-buffered patches stream stays well under v7x's 32 MiB scoped VMEM
    even with resident weights.
    """
    per_row = k_pad * dtype_bytes
    if hw * per_row * 2 <= budget_bytes:
        return hw                                   # one block per image
    max_rows = budget_bytes // (2 * per_row)
    best = None
    t = 8
    while t <= min(hw, max_rows):
        if hw % t == 0:
            best = t
        t += 8
    # Fallback: full extent (a block dim equal to the array dim is exempt
    # from the (8,128) rule).
    return best if best is not None else hw


def _conv_pool_kernel(inv_hw, p_ref, cw_ref, cb_ref, feat_ref, acc_ref):
    """One grid step = one image (b) x one row block (r) of the im2col matrix.

    NOTE: the pooled-sum accumulator assumes the row axis is the innermost
    (fastest-varying) grid axis.  Do not reorder grid=(B, n_r).

    p_ref   : [1, R_TILE, K_PAD]  bf16 im2col patches (K zero-padded to 32)
    cw_ref  : [K_PAD, C_PAD]      bf16 flattened conv weight (zero-padded)
    cb_ref  : [1, C_PAD]          f32 conv bias (zero-padded)
    feat_ref: [1, 1, C_PAD]       f32 pooled features for this image
    acc_ref : [1, C_PAD]          f32 running pooled sum (VMEM scratch)
    """
    r = pl.program_id(1)

    @pl.when(r == 0)
    def _():
        acc_ref[...] = jnp.zeros_like(acc_ref)

    # bf16 x bf16 -> f32 accumulate, single K=32 pass on the MXU.
    y = jnp.dot(p_ref[0], cw_ref[...], preferred_element_type=jnp.float32)
    y = jnp.maximum(y + cb_ref[...], 0.0)               # bias + ReLU (f32, lane-dense)
    acc_ref[...] += jnp.sum(y, axis=0, keepdims=True)   # pooled sum

    @pl.when(r == pl.num_programs(1) - 1)
    def _():
        feat_ref[...] = (acc_ref[...] * inv_hw)[None]   # global average pool


def _fc_kernel(f_ref, w_ref, b_ref, o_ref):
    """Batched FC head: [B, C_PAD] x [C_PAD, NC_PAD] + bias, one MXU matmul."""
    o_ref[...] = jnp.dot(f_ref[...], w_ref[...],
                         preferred_element_type=jnp.float32) + b_ref[...]


def custom_model_forward(x_nchw, conv_w, conv_b, fc_w, fc_b):
    """x_nchw: [B, Cin, H, W] (PyTorch layout). Returns logits [B, num_classes]."""
    B, Cin, H, W = x_nchw.shape
    Cout = conv_w.shape[0]
    num_classes = fc_w.shape[0]
    HW = H * W
    K = 9 * Cin
    K_PAD = _round_up(K, 8)                      # 27 -> 32
    C_PAD = _round_up(max(Cout, 128), 128)       # lane-dense channels
    NC_PAD = _round_up(max(num_classes, 128), 128)

    # ---- wrapper-side glue: im2col in bf16 (halves HBM bytes vs f32) ----
    # TODO(synk): build patches in-kernel from an NHWC row slab with halo to
    # avoid the 9x im2col materialization entirely (biggest remaining win on v5e).
    x_nhwc = jnp.transpose(x_nchw, (0, 2, 3, 1))                     # NCHW -> NHWC
    xp = jnp.pad(x_nhwc, ((0, 0), (1, 1), (1, 1), (0, 0)))           # conv pad=1
    cols = [xp[:, dy:dy + H, dx:dx + W, :] for dy in range(3) for dx in range(3)]
    patches = jnp.concatenate(cols, axis=-1).reshape(B, HW, K)       # [B, HW, 9*Cin]
    patches = jnp.pad(patches, ((0, 0), (0, 0), (0, K_PAD - K))).astype(jnp.bfloat16)

    # Conv weight -> [K_PAD, C_PAD] bf16 (tap-major, matching `cols` order).
    cw_flat = jnp.transpose(conv_w, (2, 3, 1, 0)).reshape(K, Cout).astype(jnp.float32)
    cw = jnp.zeros((K_PAD, C_PAD), jnp.float32).at[:K, :Cout].set(cw_flat)
    cw = cw.astype(jnp.bfloat16)
    cb = jnp.zeros((1, C_PAD), jnp.float32).at[0, :Cout].set(conv_b.astype(jnp.float32))

    # FC weight/bias, zero-padded to lane-dense shapes (f32, tiny).
    fw = jnp.zeros((C_PAD, NC_PAD), jnp.float32).at[:Cout, :num_classes].set(
        jnp.transpose(fc_w, (1, 0)).astype(jnp.float32))
    fb = jnp.zeros((1, NC_PAD), jnp.float32).at[0, :num_classes].set(
        fc_b.astype(jnp.float32))

    r_tile = _row_tile(HW, K_PAD)
    n_r = HW // r_tile

    conv_kernel = functools.partial(_conv_pool_kernel, float(1.0 / HW))

    # ---- kernel 1: conv (as matmul) + bias + ReLU + global-avg-pool ----
    feats = pl.pallas_call(
        conv_kernel,
        out_shape=jax.ShapeDtypeStruct((B, 1, C_PAD), jnp.float32),
        grid_spec=pltpu.PrefetchScalarGridSpec(
            num_scalar_prefetch=0,
            grid=(B, n_r),                                   # r innermost (accumulator!)
            in_specs=[
                pl.BlockSpec((1, r_tile, K_PAD), lambda b, r: (b, r, 0)),  # patches
                pl.BlockSpec((K_PAD, C_PAD), lambda b, r: (0, 0)),         # conv w
                pl.BlockSpec((1, C_PAD), lambda b, r: (0, 0)),             # conv b
            ],
            out_specs=pl.BlockSpec((1, 1, C_PAD), lambda b, r: (b, 0, 0)),
            scratch_shapes=[pltpu.VMEM((1, C_PAD), jnp.float32)],
        ),
        compiler_params=pltpu.CompilerParams(
            dimension_semantics=("parallel", "arbitrary"),
            vmem_limit_bytes=32 << 20),
    )(patches, cw, cb)

    # ---- kernel 2: batched FC head (one [B,C_PAD] x [C_PAD,NC_PAD] matmul) ----
    feats2d = feats.reshape(B, C_PAD)
    logits = pl.pallas_call(
        _fc_kernel,
        out_shape=jax.ShapeDtypeStruct((B, NC_PAD), jnp.float32),
        grid_spec=pltpu.PrefetchScalarGridSpec(
            num_scalar_prefetch=0,
            grid=(1,),
            in_specs=[
                pl.BlockSpec((B, C_PAD), lambda i: (0, 0)),
                pl.BlockSpec((C_PAD, NC_PAD), lambda i: (0, 0)),
                pl.BlockSpec((1, NC_PAD), lambda i: (0, 0)),
            ],
            out_specs=pl.BlockSpec((B, NC_PAD), lambda i: (0, 0)),
        ),
        compiler_params=pltpu.CompilerParams(
            dimension_semantics=("arbitrary",)),
    )(feats2d, fw, fb)

    return logits[:, :num_classes]


def reference_forward(x_nchw, conv_w, conv_b, fc_w, fc_b):
    """Pure-JAX f32 reference of the same forward pass (NCHW, like PyTorch)."""
    y = jax.lax.conv_general_dilated(
        x_nchw, conv_w, window_strides=(1, 1), padding=((1, 1), (1, 1)),
        dimension_numbers=("NCHW", "OIHW", "NCHW"))
    y = y + conv_b[None, :, None, None]
    y = jnp.maximum(y, 0.0)
    feats = jnp.mean(y, axis=(2, 3))          # avgpool + squeeze -> [B, F]
    return feats @ fc_w.T + fc_b


if __name__ == "__main__":
    # Small shapes: batch=2, in-channels=3, spatial=16, num_ftrs=32, num_classes=10
    B, Cin, H, W = 2, 3, 16, 16
    NUM_FTRS, NUM_CLASSES = 32, 10

    key = jax.random.PRNGKey(0)
    kx, kcw, kcb, kfw, kfb = jax.random.split(key, 5)

    x = jax.random.normal(kx, (B, Cin, H, W), jnp.float32)
    conv_w = 0.1 * jax.random.normal(kcw, (NUM_FTRS, Cin, 3, 3), jnp.float32)
    conv_b = 0.1 * jax.random.normal(kcb, (NUM_FTRS,), jnp.float32)
    fc_w = 0.1 * jax.random.normal(kfw, (NUM_CLASSES, NUM_FTRS), jnp.float32)
    fc_b = 0.1 * jax.random.normal(kfb, (NUM_CLASSES,), jnp.float32)

    out = custom_model_forward(x, conv_w, conv_b, fc_w, fc_b)
    out = jax.block_until_ready(out)

    ref = reference_forward(x, conv_w, conv_b, fc_w, fc_b)
    assert out.shape == (B, NUM_CLASSES)
    # bf16 MXU operands on the conv path -> slightly looser tolerance than f32.
    assert jnp.max(jnp.abs(out - ref)) < 2e-2, "mismatch vs reference"

    print("KERNEL_OK")
</pallas_src>

<mosaic_0001>
module attributes {stable_mosaic.version = 11 : i64} {
  func.func @_conv_pool_kernel(%arg0: i32, %arg1: i32, %arg2: memref<1x256x32xbf16, #tpu.memory_space<vmem>>, %arg3: memref<32x128xbf16, #tpu.memory_space<vmem>>, %arg4: memref<1x128xf32, #tpu.memory_space<vmem>>, %arg5: memref<1x1x128xf32, #tpu.memory_space<vmem>>, %arg6: memref<1x128xf32, #tpu.memory_space<vmem>>) attributes {dimension_semantics = [#tpu.dimension_semantics<parallel>, #tpu.dimension_semantics<arbitrary>], iteration_bounds = array<i64: 2, 1>, scalar_prefetch = 0 : i64, scratch_operands = 1 : i64, tpu.core_type = #tpu.core_type<tc>, window_params = [{transform_indices = @transform_0, window_bounds = array<i64: 1, 256, 32>}, {pipeline_mode = #tpu.pipeline_mode<synchronous>, transform_indices = @transform_1, window_bounds = array<i64: 32, 128>}, {pipeline_mode = #tpu.pipeline_mode<synchronous>, transform_indices = @transform_2, window_bounds = array<i64: 1, 128>}, {transform_indices = @transform_3, window_bounds = array<i64: 1, 1, 128>}]} {
    %c0_i32 = arith.constant 0 : i32
    %0 = arith.cmpi eq, %arg1, %c0_i32 : i32
    %1 = arith.extui %0 : i1 to i32
    %c0_i32_0 = arith.constant 0 : i32
    %2 = arith.cmpi ne, %1, %c0_i32_0 : i32
    scf.if %2 {
      %cst_15 = arith.constant 0.000000e+00 : f32
      %20 = vector.broadcast %cst_15 : f32 to vector<1x128xf32>
      %c0_16 = arith.constant 0 : index
      %c0_17 = arith.constant 0 : index
      %21 = vector.load %arg6[%c0_16, %c0_17] : memref<1x128xf32, #tpu.memory_space<vmem>>, vector<1x128xf32>
      tpu.vector_store %arg6[%c0_16, %c0_17], %20 {strides = array<i32>} : memref<1x128xf32, #tpu.memory_space<vmem>>, vector<1x128xf32>,
    } else {
    }
    %c0 = arith.constant 0 : index
    %c0_1 = arith.constant 0 : index
    %c0_2 = arith.constant 0 : index
    %3 = vector.load %arg2[%c0, %c0_1, %c0_2] : memref<1x256x32xbf16, #tpu.memory_space<vmem>>, vector<1x256x32xbf16>
    %4 = vector.shape_cast %3 : vector<1x256x32xbf16> to vector<256x32xbf16>
    %c0_3 = arith.constant 0 : index
    %c0_4 = arith.constant 0 : index
    %5 = vector.load %arg3[%c0_3, %c0_4] : memref<32x128xbf16, #tpu.memory_space<vmem>>, vector<32x128xbf16>
    %cst = arith.constant dense<0.000000e+00> : vector<256x128xf32>
    %6 = tpu.matmul %4, %5, %cst {dimension_numbers = #tpu.dot_dimension_numbers<[1], [0], [0], [1], [0, 0, 1, 1], [], []>} : vector<256x32xbf16>, vector<32x128xbf16>, vector<256x128xf32> -> vector<256x128xf32>
    %c0_5 = arith.constant 0 : index
    %c0_6 = arith.constant 0 : index
    %7 = vector.load %arg4[%c0_5, %c0_6] : memref<1x128xf32, #tpu.memory_space<vmem>>, vector<1x128xf32>
    %8 = vector.broadcast %7 : vector<1x128xf32> to vector<256x128xf32>
    %9 = arith.addf %6, %8 : vector<256x128xf32>
    %cst_7 = arith.constant 0.000000e+00 : f32
    %10 = vector.broadcast %cst_7 : f32 to vector<256x128xf32>
    %11 = arith.maximumf %9, %10 : vector<256x128xf32>
    %c0_8 = arith.constant 0 : index
    %c0_9 = arith.constant 0 : index
    %12 = vector.load %arg6[%c0_8, %c0_9] : memref<1x128xf32, #tpu.memory_space<vmem>>, vector<1x128xf32>
    %cst_10 = arith.constant dense<0.000000e+00> : vector<128xf32>
    %13 = vector.multi_reduction <add>, %11, %cst_10 [0] : vector<256x128xf32> to vector<128xf32>
    %14 = vector.shape_cast %13 : vector<128xf32> to vector<1x128xf32>
    %15 = arith.addf %12, %14 : vector<1x128xf32>
    %c0_11 = arith.constant 0 : index
    %c0_12 = arith.constant 0 : index
    %16 = vector.load %arg6[%c0_11, %c0_12] : memref<1x128xf32, #tpu.memory_space<vmem>>, vector<1x128xf32>
    tpu.vector_store %arg6[%c0_11, %c0_12], %15 {strides = array<i32>} : memref<1x128xf32, #tpu.memory_space<vmem>>, vector<1x128xf32>,
    %c0_i32_13 = arith.constant 0 : i32
    %17 = arith.cmpi eq, %arg1, %c0_i32_13 : i32
    %18 = arith.extui %17 : i1 to i32
    %c0_i32_14 = arith.constant 0 : i32
    %19 = arith.cmpi ne, %18, %c0_i32_14 : i32
    scf.if %19 {
      %c0_15 = arith.constant 0 : index
      %c0_16 = arith.constant 0 : index
      %20 = vector.load %arg6[%c0_15, %c0_16] : memref<1x128xf32, #tpu.memory_space<vmem>>, vector<1x128xf32>
      %cst_17 = arith.constant 3.906250e-03 : f32
      %21 = vector.broadcast %cst_17 : f32 to vector<1x128xf32>
      %22 = arith.mulf %20, %21 : vector<1x128xf32>
      %23 = vector.shape_cast %22 : vector<1x128xf32> to vector<1x1x128xf32>
      %c0_18 = arith.constant 0 : index
      %c0_19 = arith.constant 0 : index
      %c0_20 = arith.constant 0 : index
      %24 = vector.load %arg5[%c0_18, %c0_19, %c0_20] : memref<1x1x128xf32, #tpu.memory_space<vmem>>, vector<1x1x128xf32>
      tpu.vector_store %arg5[%c0_18, %c0_19, %c0_20], %23 {strides = array<i32>} : memref<1x1x128xf32, #tpu.memory_space<vmem>>, vector<1x1x128xf32>,
    } else {
    }
    return
  }
  func.func @transform_0(%arg0: i32, %arg1: i32) -> (i32, i32, i32) {
    %c0_i32 = arith.constant 0 : i32
    %c0_i32_0 = arith.constant 0 : i32
    return %arg0, %arg1, %c0_i32 : i32, i32, i32
  }
  func.func @transform_1(%arg0: i32, %arg1: i32) -> (i32, i32) {
    %c0_i32 = arith.constant 0 : i32
    %c0_i32_0 = arith.constant 0 : i32
    %c0_i32_1 = arith.constant 0 : i32
    return %c0_i32, %c0_i32_0 : i32, i32
  }
  func.func @transform_2(%arg0: i32, %arg1: i32) -> (i32, i32) {
    %c0_i32 = arith.constant 0 : i32
    %c0_i32_0 = arith.constant 0 : i32
    %c0_i32_1 = arith.constant 0 : i32
    return %c0_i32, %c0_i32_0 : i32, i32
  }
  func.func @transform_3(%arg0: i32, %arg1: i32) -> (i32, i32, i32) {
    %c0_i32 = arith.constant 0 : i32
    %c0_i32_0 = arith.constant 0 : i32
    %c0_i32_1 = arith.constant 0 : i32
    return %arg0, %c0_i32, %c0_i32_0 : i32, i32, i32
  }
}

</mosaic_0001>

<bundles_post_ra>
// kernel: tpu_custom_call.1
= control target key start
LH: loop header
LB: loop body
LE: loop exit
PB: predicated region body
PF: predicated region fallthrough
CT: control target
= control target key end

     0   :  { %8 = vsyncpa [#allocation4], 0  ;;  %s1185_s0 = inlined_call_operand.vmem [shape: bf16[2,256,32], index: 0, kind: input, shape index: {}]   ;;  %s1186_s1 = inlined_call_operand.vmem [shape: bf16[32,128], index: 1, kind: input, shape index: {}]   ;;  %s1187_s2 = inlined_call_operand.vmem [shape: f32[1,128], index: 2, kind: input, shape index: {}]   ;;  %s1188_s3 = inlined_call_operand.hbm [shape: f32[2,1,128], index: 3, kind: output, shape index: {}]  }
   0x1   :  { %10 = vsyncpa [#allocation4 + $0x1], 0  ;;  %s987_s12 = smov 0   ;;  %s989_s13 = smov 0  }
   0x2   :  { %s991_s14 = smov 0   ;;  %s993_s15 = smov 0  }
   0x3   :  { %s995_s16 = smov 0   ;;  %s997_s17 = smov 0  }
   0x4 LB: > { %s707_s18 = sadd.s32 4294967295, %s963_s17   ;;  %s708_s19 = sadd.s32 4294967294, %s963_s17   ;;  %s963_s17 = sphi %s997_s17, %s16_s17   ;;  %s959_s16 = sphi %s995_s16, %s1195_s16   ;;  %s955_s15 = sphi %s993_s15, %s1194_s15   ;;  %s951_s14 = sphi %s991_s14, %s1193_s14   ;;  %s947_s13 = sphi %s989_s13, %s1192_s13   ;;  %s943_s12 = sphi %s987_s12, %s1191_s12  }
   0x5   : > { %s28_s20 = sadd.s32 1, %s959_s16  ;;  %s105_s21 = sadd.s32 1, %s951_s14 }
   0x6   : > { %p30_p0 = scmp.ge.s32.totalorder %s28_s20, 2  ;;  %p115_p1 = scmp.ne.s32.totalorder %s951_s14, %s947_s13 }
   0x7   : > { %p116_p2 = scmp.eq.s32.totalorder %s707_s18, 1  ;;  %p121_p3 = scmp.ne.s32.totalorder %s947_s13, %s943_s12 }
   0x8   : > { %s1197_s20 = smov (%p30_p0, %s28_s20), 0  ;;  %p122_p5 = scmp.eq.s32.totalorder %s708_s19, 1 }
   0x9   : > { %p1027_p4 = por %p116_p2, %p115_p1  ;;  %s102_s23 = ssub.s32 %s959_s16, %s1197_s20 }
   0xa   : > { %p711_p6 = scmp.ge.s32.totalorder %s963_s17, 1  ;;  %p103_p7 = scmp.eq.s32.totalorder %s102_s23, 0 }
   0xb   : > { %p1034_p8 = por %p122_p5, %p121_p3  ;;  %p159_p9 = scmp.lt.s32.totalorder %s963_s17, 3 }
   0xc   : > { %s1040_s25 = scalar_select %p103_p7, %s951_s14, %s105_s21  }
   0xd   : > { %p160_p10 = pnand %p711_p6, %p159_p9 }
   0xe   : > { %v867_v0 = vld [vmem:[%s1186_s1] sm:$0xff] (!%p160_p10)   ;;  %p187_p11 = scmp.lt.s32.totalorder (!%p160_p10), %s955_s15, 1  ;;  %v868_v1 = vld [vmem:[%s1186_s1 + $0x8] sm:$0xff] (!%p160_p10)   ;;  %vm337_vm0 = vcmask (!%p160_p10), 261120   ;;  %v965_v18 = vmov (!%p160_p10), 0.0   ;;  %s184_s10 = sand.u32 (!%p160_p10), 1, %s947_s13  }
   0xf   : > { %163 = sbr.rel (%p160_p10) target bundleno = 347 (0x15b), region = 32  ;;  %771 = vmatprep.subr.bf16.mxu0 (!%p160_p10), %v867_v0  ;;  %807 = vmatprep.subr.bf16.mxu1 (!%p160_p10), %v867_v0  ;;  %201 = vst [vmem:[#allocation2] sm:$0x1] (!%p160_p10), %v965_v18  ;;  %v1090_v19 = vld [vmem:[%s1187_s2] ss:$0 sm:$0xff] (!%p160_p10)  ;;  %s749_s11 = sshll.u32 (!%p160_p10), %s955_s15, 4 }
  0x10   : > { %772 = vmatpush3.bf16.msra.mxu0 (!%p160_p10), %v867_v0  ;;  %809 = vmatpush3.bf16.msra.mxu1 (!%p160_p10), %v867_v0  ;;  %s185_s18 = scalar_lea.vmem (!%p160_p10), [#allocation3], %s184_s10  ;;  %s1138_s26 = scalar_lea.hbm (!%p160_p10), %s1188_s3, %s749_s11 }
  0x11   : > { %773 = vmatprep.subr.bf16.mxu0 (!%p160_p10), %v868_v1  ;;  %808 = vmatprep.subr.bf16.mxu1 (!%p160_p10), %v868_v1  ;;  %s638_s19 = sshll.u32 (!%p160_p10), %s185_s18, 4  ;;  %s626_s27 = scalar_lea.sflag (!%p160_p10), [#allocation4], %s184_s10  ;;  %s1140_s19 = int_to_ptr.vmem [resolvable:$true] %s638_s19 }
  0x12   : > { %s885_s28 = scalar_lea.vmem (!%p160_p10), %s1140_s19, 16 }
  0x13   : > { %p886_p12 = scmp.ne.s32.totalorder (!%p160_p10), %s1140_s19, %s885_s28 }
  0x14   : > { %774 = vmatpush3.bf16.msra.mxu0 (!%p160_p10), %v868_v1  ;;  %810 = vmatpush3.bf16.msra.mxu1 (!%p160_p10), %v868_v1 }
  0x15   : > { %p887_p13 = pnand (!%p160_p10), %p886_p12, %p1027_p4 }
  0x16   : > { %s188_s30 = scalar_select %p187_p11, %s955_s15, 1 }
  0x17   : > { %p888_p0 = pneg %p887_p13  ;;  %s966_s15 = smov [#allocation3]  }
  0x18   : > { %s752_s4 = sshll.u32 %s188_s30, 7  ;;  %s889_s29 = sshll.u32 %s966_s15, 4  ;;  %s890_s29 = int_to_ptr.vmem [resolvable:$false] %s889_s29 }
  0x19   : > { %s1053_s7 = scalar_lea.vmem %s1185_s0, %s752_s4  ;;  %s891_s30 = scalar_lea.vmem %s890_s29, 32 }
  0x1a   : > { %v869_v2 = vld [vmem:[%s1053_s7] sm:$0xff]   ;;  %v870_v3 = vld [vmem:[%s1053_s7 + $0x8] sm:$0xff]   ;;  %v871_v4 = vld [vmem:[%s1053_s7 + $0x10] sm:$0xff]   ;;  %p892_p1 = scmp.lt.s32.totalorder %s1140_s19, %s890_s29  ;;  %p893_p2 = scmp.lt.s32.totalorder %s891_s30, %s885_s28 }
  0x1b   : > { %775 = vmatprep.mubr.msk.bf16.mxu0 %vm337_vm0, %v869_v2  ;;  %v872_v5 = vld [vmem:[%s1053_s7 + $0x18] sm:$0xff]   ;;  %v873_v6 = vld [vmem:[%s1053_s7 + $0x20] sm:$0xff]   ;;  %v878_v8 = vld [vmem:[%s1053_s7 + $0x48] sm:$0xff]  }
  0x1c   : > { %776 = vmatmul.mubr.msk.bf16.vlgmr.msra.gmra.mrb[0].mxu0 %vm337_vm0, %v870_v3  ;;  %v877_v7 = vld [vmem:[%s1053_s7 + $0x40] sm:$0xff]   ;;  %v879_v9 = vld [vmem:[%s1053_s7 + $0x50] sm:$0xff]   ;;  %v880_v10 = vld [vmem:[%s1053_s7 + $0x58] sm:$0xff]   ;;  %p894_p3 = por %p893_p2, %p892_p1 }
  0x1d   : > { %779 = vmatprep.mubr.msk.bf16.mxu0 %vm337_vm0, %v871_v4  ;;  %791 = vmatprep.mubr.msk.bf16.mxu1 %vm337_vm0, %v877_v7  ;;  %v874_v11 = vld [vmem:[%s1053_s7 + $0x28] sm:$0xff]   ;;  %v881_v12 = vld [vmem:[%s1053_s7 + $0x60] sm:$0xff]   ;;  %v875_v13 = vld [vmem:[%s1053_s7 + $0x30] sm:$0xff]  }
  0x1e   : > { %792 = vmatmul.mubr.msk.bf16.vlgmr.msra.gmra.mrb[0].mxu1 %vm337_vm0, %v878_v8  ;;  %v882_v14 = vld [vmem:[%s1053_s7 + $0x68] sm:$0xff]   ;;  %v876_v15 = vld [vmem:[%s1053_s7 + $0x38] sm:$0xff]   ;;  %v883_v16 = vld [vmem:[%s1053_s7 + $0x70] sm:$0xff]   ;;  %p895_p5 = pnand %p894_p3, %p888_p0 }
  0x1f   : > { %795 = vmatprep.mubr.msk.bf16.mxu1 %vm337_vm0, %v879_v9  ;;  %v884_v17 = vld [vmem:[%s1053_s7 + $0x78] sm:$0xff]  }
  0x24   : > { %780 = vmatmul.mubr.msk.bf16.gmra.mrb[4].mxu0 %vm337_vm0, %v872_v5 }
  0x25   : > { %783 = vmatprep.mubr.msk.bf16.mxu0 %vm337_vm0, %v873_v6 }
  0x26   : > { %796 = vmatmul.mubr.msk.bf16.gmra.mrb[4].mxu1 %vm337_vm0, %v880_v10 }
  0x27   : > { %799 = vmatprep.mubr.msk.bf16.mxu1 %vm337_vm0, %v881_v12 }
  0x2c   : > { %784 = vmatmul.mubr.msk.bf16.gmra.mrb[8].mxu0 %vm337_vm0, %v874_v11 }
  0x2d   : > { %787 = vmatprep.mubr.msk.bf16.mxu0 %vm337_vm0, %v875_v13 }
  0x2e   : > { %800 = vmatmul.mubr.msk.bf16.gmra.mrb[8].mxu1 %vm337_vm0, %v882_v14 }
  0x2f   : > { %803 = vmatprep.mubr.msk.bf16.mxu1 %vm337_vm0, %v883_v16 }
  0x34   : > { %788 = vmatmul.mubr.msk.bf16.gmra.mrb[12].mxu0 %vm337_vm0, %v876_v15 }
  0x36   : > { %804 = vmatmul.mubr.msk.bf16.gmra.mrb[12].mxu1 %vm337_vm0, %v884_v17 }
  0xef   : > { %v777_v20 = vpop.f32.mrb[0].mxu0 }
  0xf0   : > { %v420_v21 = vpop.f32.mrb[1].mxu0  ;;  %v429_v25 = vadd.f32 %v777_v20, %v1090_v19 }
  0xf1   : > { %v421_v22 = vadd.f32 %v1090_v19, %v420_v21  ;;  %v778_v23 = vpop.f32.mrb[2].mxu0  ;;  %v1096_v30 = vpop.f32.mrb[0].mxu1 }
  0xf2   : > { %v423_v24 = vpop.f32.mrb[3].mxu0  ;;  %v432_v28 = vadd.f32 %v778_v23, %v1090_v19  ;;  %v549_v31 = vmax.f32 %v429_v25, 0.0  ;;  %v484_v34 = vpop.f32.mrb[1].mxu1 }
  0xf3   : > { %v424_v26 = vadd.f32 %v1090_v19, %v423_v24  ;;  %v547_v27 = vmax.f32 %v421_v22, 0.0  ;;  %v1098_v36 = vpop.f32.mrb[2].mxu1 }
  0xf4   : > { %v550_v37 = vmax.f32 %v432_v28, 0.0  ;;  %v487_v41 = vpop.f32.mrb[3].mxu1 }
  0xf5   : > { %v548_v29 = vmax.f32 %v424_v26, 0.0 }
  0xf7   : > { %v580_v32 = vadd.f32 %v548_v29, %v547_v27  ;;  %v781_v33 = vpop.f32.mrb[4].mxu0  ;;  %v485_v27 = vadd.f32 %v1090_v19, %v484_v34 }
  0xf8   : > { %v436_v35 = vpop.f32.mrb[5].mxu0  ;;  %v445_v43 = vadd.f32 %v781_v33, %v1090_v19 }
  0xf9   : > { %v581_v38 = vadd.f32 %v580_v32, %v549_v31  ;;  %v437_v39 = vadd.f32 %v1090_v19, %v436_v35  ;;  %v782_v40 = vpop.f32.mrb[6].mxu0  ;;  %v1104_v50 = vpop.f32.mrb[4].mxu1 }
  0xfa   : > { %v439_v42 = vpop.f32.mrb[7].mxu0  ;;  %v448_v48 = vadd.f32 %v782_v40, %v1090_v19  ;;  %v553_v51 = vmax.f32 %v445_v43, 0.0  ;;  %v500_v54 = vpop.f32.mrb[5].mxu1 }
  0xfb   : > { %v551_v44 = vmax.f32 %v437_v39, 0.0  ;;  %v582_v45 = vadd.f32 %v581_v38, %v550_v37  ;;  %v440_v46 = vadd.f32 %v1090_v19, %v439_v42  ;;  %v798_v56 = vpop.f32.mrb[6].mxu1  ;;  %v563_v38 = vmax.f32 %v485_v27, 0.0 }
  0xfc   : > { %v554_v57 = vmax.f32 %v448_v48, 0.0  ;;  %v503_v61 = vpop.f32.mrb[7].mxu1  ;;  %v488_v39 = vadd.f32 %v1090_v19, %v487_v41  ;;  %v493_v42 = vadd.f32 %v1096_v30, %v1090_v19  ;;  %v509_v41 = vadd.f32 %v1104_v50, %v1090_v19 }
  0xfd   : > { %v583_v47 = vadd.f32 %v582_v45, %v551_v44  ;;  %v552_v49 = vmax.f32 %v440_v46, 0.0  ;;  %v496_v45 = vadd.f32 %v1098_v36, %v1090_v19  ;;  %v501_v46 = vadd.f32 %v1090_v19, %v500_v54 }
  0xfe   : > { %v564_v34 = vmax.f32 %v488_v39, 0.0 }
  0xff   : > { %v584_v52 = vadd.f32 %v583_v47, %v552_v49  ;;  %v785_v53 = vpop.f32.mrb[8].mxu0  ;;  %v565_v47 = vmax.f32 %v493_v42, 0.0  ;;  %v566_v49 = vmax.f32 %v496_v45, 0.0 }
 0x100   : > { %v452_v55 = vpop.f32.mrb[9].mxu0  ;;  %v461_v63 = vadd.f32 %v785_v53, %v1090_v19  ;;  %v504_v53 = vadd.f32 %v1090_v19, %v503_v61 }
 0x101   : > { %v585_v58 = vadd.f32 %v584_v52, %v553_v51  ;;  %v453_v59 = vadd.f32 %v1090_v19, %v452_v55  ;;  %v786_v60 = vpop.f32.mrb[10].mxu0  ;;  %v801_v6 = vpop.f32.mrb[8].mxu1  ;;  %v567_v52 = vmax.f32 %v501_v46, 0.0 }
 0x102   : > { %v455_v62 = vpop.f32.mrb[11].mxu0  ;;  %v464_v4 = vadd.f32 %v786_v60, %v1090_v19  ;;  %v557_v7 = vmax.f32 %v461_v63, 0.0  ;;  %v516_v10 = vpop.f32.mrb[9].mxu1 }
 0x103   : > { %v555_v0 = vmax.f32 %v453_v59, 0.0  ;;  %v586_v1 = vadd.f32 %v585_v58, %v554_v57  ;;  %v456_v2 = vadd.f32 %v1090_v19, %v455_v62  ;;  %v802_v12 = vpop.f32.mrb[10].mxu1  ;;  %v512_v57 = vadd.f32 %v798_v56, %v1090_v19 }
 0x104   : > { %v558_v13 = vmax.f32 %v464_v4, 0.0  ;;  %v519_v17 = vpop.f32.mrb[11].mxu1  ;;  %v568_v58 = vmax.f32 %v504_v53, 0.0  ;;  %v517_v36 = vadd.f32 %v1090_v19, %v516_v10  ;;  %v569_v59 = vmax.f32 %v509_v41, 0.0 }
 0x105   : > { %v587_v3 = vadd.f32 %v586_v1, %v555_v0  ;;  %v556_v5 = vmax.f32 %v456_v2, 0.0  ;;  %v570_v54 = vmax.f32 %v512_v57, 0.0  ;;  %v520_v0 = vadd.f32 %v1090_v19, %v519_v17 }
 0x106   : > { %v571_v63 = vmax.f32 %v517_v36, 0.0  ;;  %v525_v1 = vadd.f32 %v801_v6, %v1090_v19  ;;  %v528_v50 = vadd.f32 %v802_v12, %v1090_v19 }
 0x107   : > { %v588_v8 = vadd.f32 %v587_v3, %v556_v5  ;;  %v789_v9 = vpop.f32.mrb[12].mxu0  ;;  %v572_v3 = vmax.f32 %v520_v0, 0.0 }
 0x108   : > { %v468_v11 = vpop.f32.mrb[13].mxu0  ;;  %v477_v20 = vadd.f32 %v789_v9, %v1090_v19  ;;  %v573_v56 = vmax.f32 %v525_v1, 0.0 }
 0x109   : > { %v589_v14 = vadd.f32 %v588_v8, %v557_v7  ;;  %v469_v15 = vadd.f32 %v1090_v19, %v468_v11  ;;  %v790_v16 = vpop.f32.mrb[14].mxu0  ;;  %v805_v28 = vpop.f32.mrb[12].mxu1  ;;  %v574_v7 = vmax.f32 %v528_v50, 0.0 }
 0x10a   : > { %v471_v18 = vpop.f32.mrb[15].mxu0  ;;  %v480_v25 = vadd.f32 %v790_v16, %v1090_v19  ;;  %v561_v29 = vmax.f32 %v477_v20, 0.0  ;;  %v532_v32 = vpop.f32.mrb[13].mxu1  ;;  %v541_v11 = vadd.f32 %v805_v28, %v1090_v19 }
 0x10b   : > { %v559_v21 = vmax.f32 %v469_v15, 0.0  ;;  %v590_v22 = vadd.f32 %v589_v14, %v558_v13  ;;  %v472_v23 = vadd.f32 %v1090_v19, %v471_v18  ;;  %v806_v33 = vpop.f32.mrb[14].mxu1  ;;  %v533_v4 = vadd.f32 %v1090_v19, %v532_v32 }
 0x10c   : > { %v562_v35 = vmax.f32 %v480_v25, 0.0  ;;  %v535_v40 = vpop.f32.mrb[15].mxu1  ;;  %v544_v6 = vadd.f32 %v806_v33, %v1090_v19  ;;  %v577_v12 = vmax.f32 %v541_v11, 0.0 }
 0x10d   : > { %v591_v24 = vadd.f32 %v590_v22, %v559_v21  ;;  %v560_v26 = vmax.f32 %v472_v23, 0.0  ;;  %v575_v9 = vmax.f32 %v533_v4, 0.0  ;;  %v536_v10 = vadd.f32 %v1090_v19, %v535_v40 }
 0x10e   : > { %v578_v17 = vmax.f32 %v544_v6, 0.0 }
 0x10f   : > { %v592_v31 = vadd.f32 %v591_v24, %v560_v26  ;;  %v576_v15 = vmax.f32 %v536_v10, 0.0  ;;  %v579_v26 = vld [vmem:[#allocation2] sm:$0x1] }
 0x111   : > { %v593_v37 = vadd.f32 %v592_v31, %v561_v29 }
 0x113   : > { %v594_v43 = vadd.f32 %v593_v37, %v562_v35 }
 0x115   : > { %v595_v44 = vadd.f32 %v594_v43, %v563_v38 }
 0x117   : > { %v596_v48 = vadd.f32 %v595_v44, %v564_v34 }
 0x119   : > { %v597_v51 = vadd.f32 %v596_v48, %v565_v47 }
 0x11b   : > { %v598_v55 = vadd.f32 %v597_v51, %v566_v49 }
 0x11d   : > { %v599_v30 = vadd.f32 %v598_v55, %v567_v52 }
 0x11f   : > { %v600_v60 = vadd.f32 %v599_v30, %v568_v58 }
 0x121   : > { %v601_v62 = vadd.f32 %v600_v60, %v569_v59 }
 0x123   : > { %v602_v61 = vadd.f32 %v601_v62, %v570_v54 }
 0x125   : > { %v603_v2 = vadd.f32 %v602_v61, %v571_v63 }
 0x127   : > { %v604_v5 = vadd.f32 %v603_v2, %v572_v3 }
 0x129   : > { %v605_v8 = vadd.f32 %v604_v5, %v573_v56 }
 0x12b   : > { %v606_v13 = vadd.f32 %v605_v8, %v574_v7 }
 0x12d   : > { %v607_v14 = vadd.f32 %v606_v13, %v575_v9 }
 0x12f   : > { %v608_v16 = vadd.f32 %v607_v14, %v576_v15 }
 0x131   : > { %v609_v18 = vadd.f32 %v608_v16, %v577_v12 }
 0x133   : > { %v610_v20 = vadd.f32 %v609_v18, %v578_v17 }
 0x135   : > { %v611_v21 = vrot.slane %v610_v20, 4 }
 0x137   : > { %v612_v22 = vadd.f32 %v611_v21, %v610_v20 }
 0x139   : > { %v613_v23 = vrot.slane %v612_v22, 2 }
 0x13b   : > { %v614_v24 = vadd.f32 %v613_v23, %v612_v22 }
 0x13d   : > { %v615_v25 = vrot.slane %v614_v24, 1 }
 0x13f   : > { %v616_v27 = vadd.f32 %v615_v25, %v614_v24 }
 0x141   : > { %v617_v28 = vadd.f32 %v616_v27, %v579_v26 }
 0x143   : > { %618 = vst [vmem:[#allocation2] sm:$0x1] %v617_v28 }
 0x14a   : > { %v622_v19 = vld [vmem:[#allocation2] sm:$0x1] }
 0x14b   : > { %v623_v29 = vmul.f32 0.00390625, %v622_v19 }
 0x14d   : > { %624 = vst [vmem:[%s185_s18] sm:$0x1] %v623_v29 }
 0x14e   : > { %898 = shalt.err (!%p895_p5)
}
 0x14f   : > { %s899_s4 = scalar_lea.hbm %s1138_s26, 16  ;;  %s903_s7 = scalar_lea.hbm %s1188_s3, 32 }
 0x150   : > { %p900_p6 = scmp.ne.s32.totalorder %s1138_s26, %s899_s4  ;;  %p904_p10 = scmp.lt.u32.totalorder %s1138_s26, %s1188_s3 }
 0x151   : > { %p905_p11 = scmp.lt.u32.totalorder %s903_s7, %s899_s4  ;;  %p907_p13 = scmp.lt.u32.totalorder %s899_s4, %s1138_s26 }
 0x152   : > { %p901_p7 = pnand %p900_p6, %p1027_p4 }
 0x153   : > { %p906_p12 = por %p905_p11, %p904_p10 }
 0x154   : > { %p902_p9 = pneg %p901_p7 }
 0x155   : > { %p908_p0 = por %p907_p13, %p906_p12 }
 0x157   : > { %p909_p1 = pnand %p908_p0, %p902_p9 }
 0x159   : > { %912 = shalt.err (!%p909_p1)
}
 0x15a   : > { %811 = dma.vmem_to_hbm [thread:$0]  (%p1027_p4), %s1140_s19, 16, %s1138_s26, %s626_s27  }
 0x15b PF: > { %p817_p2 = scmp.ge.s32.totalorder %s963_s17, 2  ;;  %s650_s10 = sand.u32 1, %s943_s12  }
 0x15c   : > { %s651_s11 = scalar_lea.sflag [#allocation4], %s650_s10 }
 0x15d   : > { %p814_p3 = pnand %p817_p2, %p1034_p8 }
 0x15f   : > { %938 = dma.done.wait (!%p814_p3), %s651_s11, 16  }
 0x160   : > { %940 = vsyncadd (!%p814_p3), %s651_s11, 4294967280  ;;  %s16_s17 = sadd.s32 1, %s963_s17   ;;  %s1191_s12 = smov %s947_s13 }
 0x161   : > { %p13_p5 = scmp.ge.s32.totalorder %s16_s17, 4   ;;  %s1192_s13 = smov %s951_s14 }
 0x162   : > { %s1193_s14 = smov %s1040_s25  ;;  %s1194_s15 = smov %s959_s16 }
 0x163   : > { %s1195_s16 = smov %s1197_s20  ;;  %15 = sbr.rel (!%p13_p5) target bundleno = 4 (0x4), region = 75 }
 0x16a   :  { %655 = vsyncpa [#allocation4], 1 }
 0x16b   :  { %657 = vsyncpa [#allocation4 + $0x1], 1 }

</bundles_post_ra>
